<compile_context>
chip_gen: v6e
topology: v6e:2x2x1
jax: 0.10.0
libtpu: 0.0.40
codegen_flags: <defaults>
</compile_context>

<pallas_src>
import functools

import jax
import jax.numpy as jnp
from jax import lax
from jax.experimental import pallas as pl
from jax.experimental.pallas import tpu as pltpu


_PER_BUFFER_BUDGET = 8 * 1024 * 1024  # bytes per pipelined CLS buffer


def _agg_matching_kernel(cls_ref, w_ref, b_ref, out_ref, acc_ref, *, batch, tile_b):
    # cls_ref: (tile_b, H)     CLS-token tile for this grid step (pipelined)
    # w_ref:   (H, C)          pre-transposed Linear weight (resident)
    # b_ref:   (1, C)          bias (resident)
    # out_ref: (1, C)          logits (resident across the grid, written last step)
    # acc_ref: (acc_rows, H)   f32 running CLS sum (8 rows when tile_b % 8 == 0)
    i = pl.program_id(0)
    last = pl.num_programs(0) - 1

    @pl.when(i == 0)
    def _init():
        acc_ref[...] = jnp.zeros_like(acc_ref)

    x = cls_ref[...].astype(jnp.float32)            # accumulate in f32
    acc_rows = acc_ref.shape[0]

    def accumulate(xv):
        if acc_rows == 8:
            # Sublane-aligned VPU adds only; the one cross-sublane reduce is
            # deferred to the finalize step.
            acc_ref[...] += xv.reshape(tile_b // 8, 8, xv.shape[-1]).sum(axis=0)
        else:
            acc_ref[...] += jnp.sum(xv, axis=0, keepdims=True)

    if batch % tile_b != 0:
        # Only the final tile carries padded rows -> mask only there and keep
        # the steady-state loop mask-free.
        @pl.when(i != last)
        def _full_tile():
            accumulate(x)

        @pl.when(i == last)
        def _partial_tile():
            row = i * tile_b + lax.broadcasted_iota(jnp.int32, (tile_b, 1), 0)
            accumulate(jnp.where(row < batch, x, 0.0))
    else:
        accumulate(x)

    @pl.when(i == last)
    def _finalize():
        total = jnp.sum(acc_ref[...], axis=0, keepdims=True)      # (1, H)
        mean = total * jnp.float32(1.0 / batch)                   # divide by true B
        # NOTE: if the head weight is bf16 the f32-accumulated mean is
        # deliberately downcast to bf16 for the single M=1 MXU matmul.
        logits = jnp.dot(mean.astype(w_ref.dtype), w_ref[...],
                         preferred_element_type=jnp.float32)      # (1, C)
        out_ref[...] = (logits + b_ref[...].astype(jnp.float32)).astype(out_ref.dtype)


def init_agg_matching_params(weight, bias):
    """One-time parameter prep (out of the per-call path).

    nn.Linear stores the weight as (C, H); keep the head pre-transposed as
    (H, C) so the kernel runs a plain row-major MXU matmul.  Bias kept 2D.
    """
    return jnp.asarray(weight).T, jnp.asarray(bias).reshape(1, -1)


def _pick_batch_tile(batch, hidden, itemsize, max_tile_b=None):
    # Budget-derived tile: ~8 MiB per pipelined buffer, multiple of 8,
    # capped at 2048; or the full batch (always a legal block).
    cap = max(_PER_BUFFER_BUDGET // max(hidden * itemsize, 1), 8)
    cap = min(cap, 2048)
    cap = (cap // 8) * 8
    if max_tile_b is not None:
        cap = min(cap, max(8, (max_tile_b // 8) * 8))
    if batch <= cap:
        return batch            # equals the full array dim -> always legal
    return cap                  # multiple of 8


def _vmem_limit_bytes(tile_b, hidden, n_classes, x_itemsize, w_itemsize):
    need = (2 * tile_b * hidden * x_itemsize       # double-buffered CLS tiles
            + 2 * hidden * n_classes * w_itemsize  # resident weight (+slack)
            + 8 * hidden * 4                       # f32 accumulator
            + 8 * n_classes * 4 + 4096)            # bias / output / misc
    # Clamp into a range legal on every generation (v5e default scoped VMEM is
    # 16 MiB; v7x physical VMEM is 64 MiB).
    return int(min(max(2 * need, 32 * 1024 * 1024), 48 * 1024 * 1024))


@functools.partial(jax.jit, static_argnames=("max_tile_b",))
def agg_matching_forward(features, w_t, b2, *, max_tile_b=None):
    """features: (B, S, H); w_t: (H, C) pre-transposed weight; b2: (1, C)."""
    B, S, H = features.shape
    C = w_t.shape[1]
    x_itemsize = jnp.dtype(features.dtype).itemsize

    tile_b = _pick_batch_tile(B, H, x_itemsize, max_tile_b)
    num_tiles = pl.cdiv(B, tile_b)
    acc_rows = 8 if tile_b % 8 == 0 else 1

    # Fuse the CLS slice into the kernel's own strided DMA when the hidden
    # size is lane-friendly: block (i, 0) of the free (B, S*H) view with shape
    # (tile_b, H) is exactly the CLS plane.  Fallback: slice in the wrapper.
    if (H % 128 == 0) or (S == 1):
        cls_in = features.reshape(B, S * H)
    else:
        cls_in = features[:, 0, :]

    kernel = functools.partial(_agg_matching_kernel, batch=B, tile_b=tile_b)

    return pl.pallas_call(
        kernel,
        out_shape=jax.ShapeDtypeStruct((1, C), jnp.float32),
        grid_spec=pltpu.PrefetchScalarGridSpec(
            num_scalar_prefetch=0,
            grid=(num_tiles,),
            in_specs=[
                pl.BlockSpec((tile_b, H), lambda i: (i, 0)),   # pipelined CLS tiles
                pl.BlockSpec((H, C), lambda i: (0, 0)),        # resident weight
                pl.BlockSpec((1, C), lambda i: (0, 0)),        # resident bias
            ],
            out_specs=pl.BlockSpec((1, C), lambda i: (0, 0)),  # resident output
            scratch_shapes=[pltpu.VMEM((acc_rows, H), jnp.float32)],
        ),
        compiler_params=pltpu.CompilerParams(
            dimension_semantics=("arbitrary",),                # grid axis is a reduction
            vmem_limit_bytes=_vmem_limit_bytes(
                tile_b, H, C, x_itemsize, jnp.dtype(w_t.dtype).itemsize),
        ),
    )(cls_in, w_t, b2)


def _reference(features, weight, bias):
    return jnp.mean(features[:, 0], axis=0, keepdims=True) @ weight.T + bias


if __name__ == "__main__":
    key = jax.random.PRNGKey(0)

    # ---- Test 1: small module-consistent shapes (fallback slice path) ----
    B, S, H = 2, 8, 32          # batch, seq, hidden_size
    n_classes = 4               # config.regression = False
    k_feat, k_w, k_b, key = jax.random.split(key, 4)
    features = jax.random.normal(k_feat, (B, S, H), dtype=jnp.float32)
    weight = jax.random.normal(k_w, (n_classes, H), dtype=jnp.float32) * 0.02
    bias = jax.random.normal(k_b, (n_classes,), dtype=jnp.float32) * 0.02

    w_t, b2 = init_agg_matching_params(weight, bias)
    logits = agg_matching_forward(features, w_t, b2)
    jax.block_until_ready(logits)
    ref = _reference(features, weight, bias)
    assert logits.shape == (1, n_classes)
    assert jnp.allclose(logits, ref, atol=1e-5, rtol=1e-5)

    # ---- Test 2: fused-DMA path, multi-tile grid with a partial last tile ----
    B2, S2, H2 = 20, 4, 128
    k_feat, k_w, k_b, key = jax.random.split(key, 4)
    features2 = jax.random.normal(k_feat, (B2, S2, H2), dtype=jnp.float32)
    weight2 = jax.random.normal(k_w, (n_classes, H2), dtype=jnp.float32) * 0.02
    bias2 = jax.random.normal(k_b, (n_classes,), dtype=jnp.float32) * 0.02

    w_t2, b22 = init_agg_matching_params(weight2, bias2)
    logits2 = agg_matching_forward(features2, w_t2, b22, max_tile_b=8)
    jax.block_until_ready(logits2)
    ref2 = _reference(features2, weight2, bias2)
    assert logits2.shape == (1, n_classes)
    assert jnp.allclose(logits2, ref2, atol=1e-5, rtol=1e-5)

    print("KERNEL_OK")
</pallas_src>

<mosaic_0001>
module attributes {stable_mosaic.version = 11 : i64} {
  func.func @_agg_matching_kernel(%arg0: i32, %arg1: memref<2x32xf32, #tpu.memory_space<vmem>>, %arg2: memref<32x4xf32, #tpu.memory_space<vmem>>, %arg3: memref<1x4xf32, #tpu.memory_space<vmem>>, %arg4: memref<1x4xf32, #tpu.memory_space<vmem>>, %arg5: memref<1x32xf32, #tpu.memory_space<vmem>>) attributes {dimension_semantics = [#tpu.dimension_semantics<arbitrary>], iteration_bounds = array<i64: 1>, scalar_prefetch = 0 : i64, scratch_operands = 1 : i64, tpu.core_type = #tpu.core_type<tc>, window_params = [{transform_indices = @transform_0, window_bounds = array<i64: 2, 32>}, {pipeline_mode = #tpu.pipeline_mode<synchronous>, transform_indices = @transform_1, window_bounds = array<i64: 32, 4>}, {pipeline_mode = #tpu.pipeline_mode<synchronous>, transform_indices = @transform_2, window_bounds = array<i64: 1, 4>}, {pipeline_mode = #tpu.pipeline_mode<synchronous>, transform_indices = @transform_3, window_bounds = array<i64: 1, 4>}]} {
    %c0_i32 = arith.constant 0 : i32
    %0 = arith.cmpi eq, %arg0, %c0_i32 : i32
    %1 = arith.extui %0 : i1 to i32
    %c0_i32_0 = arith.constant 0 : i32
    %2 = arith.cmpi ne, %1, %c0_i32_0 : i32
    scf.if %2 {
      %cst_8 = arith.constant 0.000000e+00 : f32
      %12 = vector.broadcast %cst_8 : f32 to vector<1x32xf32>
      %c0_9 = arith.constant 0 : index
      %c0_10 = arith.constant 0 : index
      %13 = vector.load %arg5[%c0_9, %c0_10] : memref<1x32xf32, #tpu.memory_space<vmem>>, vector<1x32xf32>
      tpu.vector_store %arg5[%c0_9, %c0_10], %12 {strides = array<i32>} : memref<1x32xf32, #tpu.memory_space<vmem>>, vector<1x32xf32>,
    } else {
    }
    %c0 = arith.constant 0 : index
    %c0_1 = arith.constant 0 : index
    %3 = vector.load %arg1[%c0, %c0_1] : memref<2x32xf32, #tpu.memory_space<vmem>>, vector<2x32xf32>
    %c0_2 = arith.constant 0 : index
    %c0_3 = arith.constant 0 : index
    %4 = vector.load %arg5[%c0_2, %c0_3] : memref<1x32xf32, #tpu.memory_space<vmem>>, vector<1x32xf32>
    %cst = arith.constant dense<0.000000e+00> : vector<32xf32>
    %5 = vector.multi_reduction <add>, %3, %cst [0] : vector<2x32xf32> to vector<32xf32>
    %6 = vector.shape_cast %5 : vector<32xf32> to vector<1x32xf32>
    %7 = arith.addf %4, %6 : vector<1x32xf32>
    %c0_4 = arith.constant 0 : index
    %c0_5 = arith.constant 0 : index
    %8 = vector.load %arg5[%c0_4, %c0_5] : memref<1x32xf32, #tpu.memory_space<vmem>>, vector<1x32xf32>
    tpu.vector_store %arg5[%c0_4, %c0_5], %7 {strides = array<i32>} : memref<1x32xf32, #tpu.memory_space<vmem>>, vector<1x32xf32>,
    %c0_i32_6 = arith.constant 0 : i32
    %9 = arith.cmpi eq, %arg0, %c0_i32_6 : i32
    %10 = arith.extui %9 : i1 to i32
    %c0_i32_7 = arith.constant 0 : i32
    %11 = arith.cmpi ne, %10, %c0_i32_7 : i32
    scf.if %11 {
      %c0_8 = arith.constant 0 : index
      %c0_9 = arith.constant 0 : index
      %12 = vector.load %arg5[%c0_8, %c0_9] : memref<1x32xf32, #tpu.memory_space<vmem>>, vector<1x32xf32>
      %cst_10 = arith.constant dense<0.000000e+00> : vector<32xf32>
      %13 = vector.multi_reduction <add>, %12, %cst_10 [0] : vector<1x32xf32> to vector<32xf32>
      %14 = vector.shape_cast %13 : vector<32xf32> to vector<1x32xf32>
      %cst_11 = arith.constant 5.000000e-01 : f32
      %15 = vector.broadcast %cst_11 : f32 to vector<1x32xf32>
      %16 = arith.mulf %14, %15 : vector<1x32xf32>
      %c0_12 = arith.constant 0 : index
      %c0_13 = arith.constant 0 : index
      %17 = vector.load %arg2[%c0_12, %c0_13] : memref<32x4xf32, #tpu.memory_space<vmem>>, vector<32x4xf32>
      %cst_14 = arith.constant dense<0.000000e+00> : vector<1x4xf32>
      %18 = tpu.matmul %16, %17, %cst_14 {dimension_numbers = #tpu.dot_dimension_numbers<[1], [0], [0], [1], [0, 0, 1, 1], [], []>} : vector<1x32xf32>, vector<32x4xf32>, vector<1x4xf32> -> vector<1x4xf32>
      %c0_15 = arith.constant 0 : index
      %c0_16 = arith.constant 0 : index
      %19 = vector.load %arg3[%c0_15, %c0_16] : memref<1x4xf32, #tpu.memory_space<vmem>>, vector<1x4xf32>
      %20 = arith.addf %18, %19 : vector<1x4xf32>
      %c0_17 = arith.constant 0 : index
      %c0_18 = arith.constant 0 : index
      %21 = vector.load %arg4[%c0_17, %c0_18] : memref<1x4xf32, #tpu.memory_space<vmem>>, vector<1x4xf32>
      tpu.vector_store %arg4[%c0_17, %c0_18], %20 {strides = array<i32>} : memref<1x4xf32, #tpu.memory_space<vmem>>, vector<1x4xf32>,
    } else {
    }
    return
  }
  func.func @transform_0(%arg0: i32) -> (i32, i32) {
    %c0_i32 = arith.constant 0 : i32
    %c0_i32_0 = arith.constant 0 : i32
    return %arg0, %c0_i32 : i32, i32
  }
  func.func @transform_1(%arg0: i32) -> (i32, i32) {
    %c0_i32 = arith.constant 0 : i32
    %c0_i32_0 = arith.constant 0 : i32
    %c0_i32_1 = arith.constant 0 : i32
    return %c0_i32, %c0_i32_0 : i32, i32
  }
  func.func @transform_2(%arg0: i32) -> (i32, i32) {
    %c0_i32 = arith.constant 0 : i32
    %c0_i32_0 = arith.constant 0 : i32
    %c0_i32_1 = arith.constant 0 : i32
    return %c0_i32, %c0_i32_0 : i32, i32
  }
  func.func @transform_3(%arg0: i32) -> (i32, i32) {
    %c0_i32 = arith.constant 0 : i32
    %c0_i32_0 = arith.constant 0 : i32
    %c0_i32_1 = arith.constant 0 : i32
    return %c0_i32, %c0_i32_0 : i32, i32
  }
}

</mosaic_0001>

<bundles_post_ra>
// kernel: agg_matching_forward.1
= control target key start
LH: loop header
LB: loop body
LE: loop exit
PB: predicated region body
PF: predicated region fallthrough
CT: control target
= control target key end

     0   :  { %vm19_vm0 = vcmask 253952   ;;  %vm23_vm1 = vcmask 254976   ;;  %v177_v2 = vmov 0.0   ;;  %vm178_vm2 = vmmov 0   ;;  %s223_s0 = inlined_call_operand.vmem [shape: f32[2,32], index: 0, kind: input, shape index: {}]   ;;  %s224_s1 = inlined_call_operand.vmem [shape: f32[32,4], index: 1, kind: input, shape index: {}]   ;;  %s225_s2 = inlined_call_operand.vmem [shape: f32[1,4], index: 2, kind: input, shape index: {}]   ;;  %s226_s3 = inlined_call_operand.hbm [shape: f32[1,4], index: 3, kind: output, shape index: {}]  }
   0x1   :  { %v21_v0 = vld [vmem:[%s223_s0] sm:$0x3]  ;;  %v43_v1 = vld [vmem:[%s224_s1 + $0x18] sm:$0xff]  ;;  %20 = vst.msk [vmem:[#allocation2] sm:$0x1] %vm19_vm0, %v177_v2  ;;  %141 = vmatprep.subr.mxu0 %v177_v2  ;;  %v42_v4 = vld [vmem:[%s224_s1 + $0x10] sm:$0xff]  ;;  %149 = vmatprep.mubr.msk.f32.mxu0 %vm178_vm2, %v177_v2 }
   0x2   :  { %v24_v3 = vsel %vm23_vm1, %v21_v0, 0.0  ;;  %142 = vmatpush3.msra.mxu0 %v43_v1 }
   0x3   :  { %v25_v5 = vrot.slane %v24_v3, 4 }
   0x4   :  { %8 = vsyncpa [#allocation4], 0  ;;  %143 = vmatprep.subr.mxu0 %v177_v2  ;;  %v41_v6 = vld [vmem:[%s224_s1 + $0x8] sm:$0xff]  ;;  %v40_v8 = vld [vmem:[%s224_s1] sm:$0xff]  ;;  %vm45_vm3 = vcmask 261120   ;;  %s179_s1 = smov [#allocation3]  }
   0x5   :  { %v26_v7 = vadd.f32 %v25_v5, %v24_v3  ;;  %144 = vmatpush3.msra.mxu0 %v42_v4  ;;  %v44_v17 = vld [vmem:[%s225_s2] sm:$0x1]  ;;  %s127_s23 = sshll.u32 %s179_s1, 4  ;;  %vm119_vm4 = vcmask 24576   ;;  %s128_s23 = int_to_ptr.vmem [resolvable:$true] %s127_s23 }
   0x6   :  { %145 = vmatprep.subr.mxu0 %v177_v2  ;;  %s155_s24 = scalar_lea.vmem %s128_s23, 16  ;;  %s159_s25 = scalar_lea.vmem %s128_s23, 32 }
   0x7   :  { %v27_v9 = vrot.slane %v26_v7, 2  ;;  %146 = vmatpush3.msra.mxu0 %v41_v6  ;;  %p156_p0 = scmp.ne.s32.totalorder %s128_s23, %s155_s24  ;;  %p160_p1 = scmp.lt.s32.totalorder %s128_s23, %s128_s23 }
   0x8   :  { %147 = vmatprep.subr.mxu0 %v177_v2  ;;  %v22_v12 = vld [vmem:[#allocation2] sm:$0x1]  ;;  %p161_p2 = scmp.lt.s32.totalorder %s159_s25, %s155_s24 }
   0x9   :  { %v28_v10 = vadd.f32 %v27_v9, %v26_v7  ;;  %148 = vmatpush3.msra.mxu0 %v40_v8 }
   0xa   :  { %p162_p3 = por %p161_p2, %p160_p1 }
   0xb   :  { %v29_v11 = vrot.slane %v28_v10, 1 }
   0xc   :  { %p163_p4 = pnand %p162_p3, %p156_p0 }
   0xd   :  { %v30_v13 = vadd.f32 %v29_v11, %v28_v10 }
   0xf   :  { %v31_v14 = vadd.f32 %v30_v13, %v22_v12 }
  0x11   :  { %33 = vst.msk [vmem:[#allocation2] sm:$0x1] %vm19_vm0, %v31_v14 }
  0x18   :  { %v37_v15 = vld [vmem:[#allocation2] sm:$0x1] }
  0x19   :  { %v39_v16 = vmul.f32 0.5, %v37_v15 }
  0x1b   :  { %150 = vmatmul.mubr.msk.f32.vlgmr.msra.gmra.mxu0 %vm45_vm3, %v39_v16 }
  0xdb   :  { %v115_v18 = vpop.f32.mrf.mxu0 }
  0xdc   :  { %v116_v19 = vadd.f32 %v115_v18, %v44_v17 }
  0xdd   :  { %v151_v20 = vpop.f32.mrf.mxu0 }
  0xde   :  { %120 = vst.msk [vmem:[#allocation3] sm:$0x1] %vm119_vm4, %v116_v19 }
  0xdf   :  { %166 = shalt.err (!%p163_p4)
}
  0xe0   :  { %130 = dma.vmem_to_hbm [thread:$0]  %s128_s23, 16, %s226_s3, [#allocation4]  }
  0xe1   :  { %175 = dma.done.wait [#allocation4], 16  }
  0xe2   :  { %176 = vsyncadd [#allocation4], 4294967280 }
  0xe3   :  { %134 = vsyncpa [#allocation4], 1 }

</bundles_post_ra>
